<compile_context>
chip_gen: v7x
topology: tpu7x:2x2x1
jax: 0.10.0
libtpu: 0.0.40
codegen_flags: <defaults>
</compile_context>

<pallas_src>
import functools

import jax
import jax.numpy as jnp
from jax import lax
from jax.experimental import pallas as pl
from jax.experimental.pallas import tpu as pltpu


def _round_up(x, m):
    return ((x + m - 1) // m) * m


def _tpu_generation():
    """Best-effort TPU generation detection (0 if unknown)."""
    try:
        kind = jax.devices()[0].device_kind.lower()
    except Exception:
        return 0
    for gen in (7, 6, 5, 4, 3, 2):
        if f"v{gen}" in kind or f"tpu{gen}" in kind:
            return gen
    return 0


def _pick_tq(n, c, cqp, vmem_limit_bytes):
    """Pick the query-tile width TQ (lane-dense, VMEM-budget aware)."""
    if n % 128 != 0:
        # TODO(synk): pad N up to a multiple of 128 with masked keys instead of
        # falling back to a single full-row tile (the (N, N) f32 energy would
        # blow VMEM for large HW that is not a multiple of 128).
        return n
    # Rough live-VMEM estimate: resident bf16 K/V rows (double-buffered) plus
    # the (N, TQ) f32 energy / e intermediates and the small x/out tiles.
    resident = 2 * 2 * (cqp + c) * n                      # bf16 K + V
    budget = int(0.55 * vmem_limit_bytes) - resident
    for cand in (512, 256, 128):
        if n % cand == 0 and n // cand >= 2:
            per_tile = cand * n * (4 + 4) + 2 * 2 * c * cand * 4
            if per_tile <= budget:
                return cand
    return 128


def _self_attention_kernel(x_ref, k_ref, v_ref, wq_ref, bq_ref, gamma_ref,
                           out_ref, *, exp_in_bf16):
    # x_ref:     (1, C, TQ)   this query tile of the input (q source + residual)
    # k_ref:     (1, CQP, N)  precomputed keys   (bf16, resident across tiles)
    # v_ref:     (1, C, N)    precomputed values (bf16, resident across tiles)
    # wq_ref:    (CQP, C)     query 1x1-conv weight, CQ zero-padded to CQP
    # bq_ref:    (CQP, 1)     zero-padded query bias
    # gamma_ref: (1,)         scalar in SMEM
    # out_ref:   (1, C, TQ)   output tile (residual included)
    x_q = x_ref[0]                                        # (C, TQ)  f32
    k = k_ref[0]                                          # (CQP, N) bf16
    v = v_ref[0]                                          # (C, N)   bf16

    # Query projection for this tile (tiny (CQP,C)x(C,TQ) contraction); padded
    # CQ rows are exactly zero so they add nothing to the energy.
    q = jnp.dot(wq_ref[...], x_q,
                preferred_element_type=jnp.float32) + bq_ref[...]   # (CQP, TQ)

    # energy[j, i] = sum_cq k[cq, j] * q[cq, i]  (== the module's bmm(Q^T, K),
    # transposed).  Keys on the sublane axis -> softmax stats are (1, TQ) rows.
    energy = lax.dot_general(
        k, q.astype(jnp.bfloat16),
        dimension_numbers=(((0,), (0,)), ((), ())),
        preferred_element_type=jnp.float32)               # (N, TQ)

    # softmax over keys (axis 0 here == dim=-1 of the PyTorch energy).
    m = jnp.max(energy, axis=0, keepdims=True)            # (1, TQ) f32
    if exp_in_bf16:
        # v6e/v7x: EUP has a bf16 path (~2x transcendental throughput); e is
        # consumed in bf16 by the MXU anyway.  Statistics stay in f32.
        e_mm = jnp.exp((energy - m).astype(jnp.bfloat16))              # (N, TQ) bf16
        denom = jnp.sum(e_mm.astype(jnp.float32), axis=0, keepdims=True)
    else:
        e = jnp.exp(energy - m)                                        # (N, TQ) f32
        denom = jnp.sum(e, axis=0, keepdims=True)                      # (1, TQ)
        e_mm = e.astype(jnp.bfloat16)

    # Deferred normalization: un-normalized e feeds the V matmul (canonical
    # A@B, no transpose); only the small (C, TQ) result gets scaled.
    # out[c, i] = sum_j v[c, j] * e[j, i]
    out_t = lax.dot_general(
        v, e_mm,
        dimension_numbers=(((1,), (0,)), ((), ())),
        preferred_element_type=jnp.float32)               # (C, TQ)
    out_t = out_t * pl.reciprocal(denom, approx=True)

    gamma = gamma_ref[0]
    out_ref[0] = (gamma * out_t + x_q).astype(out_ref.dtype)


def self_attention_pallas(x_nchw, wq, bq, wk, bk, wv, bv, gamma):
    """x_nchw: (B, C, H, W) float32.  PyTorch-conv-shaped params:
       wq/wk: (CQ, C, 1, 1), wv: (C, C, 1, 1), 1-D biases, gamma shape (1,)."""
    b, c, h, w = x_nchw.shape
    n = h * w
    cq = wq.shape[0]

    gen = _tpu_generation()
    exp_in_bf16 = gen >= 6                 # v5e EUP has no bf16 path
    if gen >= 7:
        vmem_limit = 48 * 1024 * 1024      # v7x: only 64 MiB physical VMEM
    elif gen >= 5:
        vmem_limit = 64 * 1024 * 1024      # v5e/v6e: 128 MiB physical VMEM
    else:
        vmem_limit = 32 * 1024 * 1024

    # Energy-contraction dim padded only to a bf16 sublane pack; padded weight
    # rows + zero bias make the extra q/k rows exactly zero (no energy effect).
    cqp = _round_up(cq, 16)
    tq = _pick_tq(n, c, cqp, vmem_limit)

    # Free reshape: NCHW -> (B, C, HW).  No transposes with this layout.
    x_tok = x_nchw.reshape(b, c, n)

    wq2 = jnp.zeros((cqp, c), wq.dtype).at[:cq, :].set(wq.reshape(cq, c))
    bq2 = jnp.zeros((cqp, 1), bq.dtype).at[:cq, 0].set(bq)
    wk2 = jnp.zeros((cqp, c), wk.dtype).at[:cq, :].set(wk.reshape(cq, c))
    bk2 = jnp.zeros((cqp, 1), bk.dtype).at[:cq, 0].set(bk)
    wv2 = wv.reshape(c, c)
    bv2 = bv.reshape(c, 1)
    gamma1 = gamma.reshape(1).astype(jnp.float32)

    # Hoisted K / V projections: computed once per batch (trivial C-sized
    # contraction) by XLA, cast to bf16 for the in-kernel MXU matmuls.
    hi = jax.lax.Precision.HIGHEST
    k_all = (jnp.einsum('oc,bcn->bon', wk2, x_tok, precision=hi)
             + bk2[None]).astype(jnp.bfloat16)            # (B, CQP, N)
    v_all = (jnp.einsum('oc,bcn->bon', wv2, x_tok, precision=hi)
             + bv2[None]).astype(jnp.bfloat16)            # (B, C, N)

    kernel = functools.partial(_self_attention_kernel, exp_in_bf16=exp_in_bf16)

    out_tok = pl.pallas_call(
        kernel,
        out_shape=jax.ShapeDtypeStruct((b, c, n), x_tok.dtype),
        grid=(b, n // tq),
        in_specs=[
            pl.BlockSpec((1, c, tq), lambda bi, qi: (bi, 0, qi)),   # x query tile
            pl.BlockSpec((1, cqp, n), lambda bi, qi: (bi, 0, 0)),   # K (resident across qi)
            pl.BlockSpec((1, c, n), lambda bi, qi: (bi, 0, 0)),     # V (resident across qi)
            pl.BlockSpec((cqp, c), lambda bi, qi: (0, 0)),          # Wq (padded)
            pl.BlockSpec((cqp, 1), lambda bi, qi: (0, 0)),          # bq (padded)
            pl.BlockSpec(memory_space=pltpu.SMEM),                  # gamma scalar
        ],
        out_specs=pl.BlockSpec((1, c, tq), lambda bi, qi: (bi, 0, qi)),
        compiler_params=pltpu.CompilerParams(
            dimension_semantics=("parallel", "parallel"),
            vmem_limit_bytes=vmem_limit,
        ),
    )(x_tok, k_all, v_all, wq2, bq2, gamma1)

    # (B, C, HW) -> NCHW is a free reshape.
    return out_tok.reshape(b, c, h, w)


def self_attention_ref(x_nchw, wq, bq, wk, bk, wv, bv, gamma):
    """Pure-JAX reference mirroring the PyTorch forward exactly (all f32)."""
    b, c, h, w = x_nchw.shape
    hw = h * w
    cq = wq.shape[0]
    x_flat = x_nchw.reshape(b, c, hw)                                   # (B, C, HW)
    q = jnp.einsum('oc,bcn->bon', wq.reshape(cq, c), x_flat) + bq[None, :, None]
    k = jnp.einsum('oc,bcn->bon', wk.reshape(cq, c), x_flat) + bk[None, :, None]
    v = jnp.einsum('oc,bcn->bon', wv.reshape(c, c), x_flat) + bv[None, :, None]
    proj_query = jnp.transpose(q, (0, 2, 1))                            # (B, HW, CQ)
    energy = jnp.einsum('bnc,bcm->bnm', proj_query, k)                  # (B, HW, HW)
    attention = jax.nn.softmax(energy, axis=-1)
    out = jnp.einsum('bcm,bnm->bcn', v, attention)                      # (B, C, HW)
    out = out.reshape(b, c, h, w)
    return gamma.reshape(()) * out + x_nchw


if __name__ == "__main__":
    key = jax.random.PRNGKey(0)
    B, C, H, W = 2, 4, 16, 16
    reduction = 2                       # so CQ = C // reduction = 2
    CQ = C // reduction

    ks = jax.random.split(key, 8)
    x = jax.random.normal(ks[0], (B, C, H, W), dtype=jnp.float32)
    wq = jax.random.normal(ks[1], (CQ, C, 1, 1), dtype=jnp.float32) * 0.2
    bq = jax.random.normal(ks[2], (CQ,), dtype=jnp.float32) * 0.1
    wk = jax.random.normal(ks[3], (CQ, C, 1, 1), dtype=jnp.float32) * 0.2
    bk = jax.random.normal(ks[4], (CQ,), dtype=jnp.float32) * 0.1
    wv = jax.random.normal(ks[5], (C, C, 1, 1), dtype=jnp.float32) * 0.2
    bv = jax.random.normal(ks[6], (C,), dtype=jnp.float32) * 0.1
    # Module initializes gamma = 0 (output == x).  Use a nonzero deterministic
    # value so the attention path is actually exercised/verified.
    gamma = jnp.array([0.5], dtype=jnp.float32)

    out = self_attention_pallas(x, wq, bq, wk, bk, wv, bv, gamma)
    out = jax.block_until_ready(out)

    ref = self_attention_ref(x, wq, bq, wk, bk, wv, bv, gamma)
    assert out.shape == (B, C, H, W)
    # bf16 MXU operands (f32 accumulation), optional bf16 exp, and approx
    # reciprocal => slightly looser tolerance than the pure-f32 reference.
    assert jnp.allclose(out, ref, atol=3e-2, rtol=3e-2), (
        f"mismatch vs reference; max abs diff = {jnp.max(jnp.abs(out - ref))}")

    print("KERNEL_OK")
</pallas_src>

<mosaic_0001>
module attributes {stable_mosaic.version = 11 : i64} {
  func.func @_self_attention_kernel(%arg0: i32, %arg1: i32, %arg2: memref<1x4x128xf32, #tpu.memory_space<vmem>>, %arg3: memref<1x16x256xbf16, #tpu.memory_space<vmem>>, %arg4: memref<1x4x256xbf16, #tpu.memory_space<vmem>>, %arg5: memref<16x4xf32, #tpu.memory_space<vmem>>, %arg6: memref<16x1xf32, #tpu.memory_space<vmem>>, %arg7: memref<1xf32, #tpu.memory_space<smem>>, %arg8: memref<1x4x128xf32, #tpu.memory_space<vmem>>) attributes {dimension_semantics = [#tpu.dimension_semantics<parallel>, #tpu.dimension_semantics<parallel>], iteration_bounds = array<i64: 2, 2>, scalar_prefetch = 0 : i64, scratch_operands = 0 : i64, tpu.core_type = #tpu.core_type<tc>, window_params = [{transform_indices = @transform_0, window_bounds = array<i64: 1, 4, 128>}, {transform_indices = @transform_1, window_bounds = array<i64: 1, 16, 256>}, {transform_indices = @transform_2, window_bounds = array<i64: 1, 4, 256>}, {pipeline_mode = #tpu.pipeline_mode<synchronous>, transform_indices = @transform_3, window_bounds = array<i64: 16, 4>}, {pipeline_mode = #tpu.pipeline_mode<synchronous>, transform_indices = @transform_4, window_bounds = array<i64: 16, 1>}, {transform_indices = @transform_5, window_bounds = array<i64: 1>}, {transform_indices = @transform_6, window_bounds = array<i64: 1, 4, 128>}]} {
    %c0 = arith.constant 0 : index
    %c0_0 = arith.constant 0 : index
    %c0_1 = arith.constant 0 : index
    %0 = vector.load %arg2[%c0, %c0_0, %c0_1] : memref<1x4x128xf32, #tpu.memory_space<vmem>>, vector<1x4x128xf32>
    %1 = vector.shape_cast %0 : vector<1x4x128xf32> to vector<4x128xf32>
    %c0_2 = arith.constant 0 : index
    %c0_3 = arith.constant 0 : index
    %c0_4 = arith.constant 0 : index
    %2 = vector.load %arg3[%c0_2, %c0_3, %c0_4] : memref<1x16x256xbf16, #tpu.memory_space<vmem>>, vector<1x16x256xbf16>
    %3 = vector.shape_cast %2 : vector<1x16x256xbf16> to vector<16x256xbf16>
    %c0_5 = arith.constant 0 : index
    %c0_6 = arith.constant 0 : index
    %c0_7 = arith.constant 0 : index
    %4 = vector.load %arg4[%c0_5, %c0_6, %c0_7] : memref<1x4x256xbf16, #tpu.memory_space<vmem>>, vector<1x4x256xbf16>
    %5 = vector.shape_cast %4 : vector<1x4x256xbf16> to vector<4x256xbf16>
    %c0_8 = arith.constant 0 : index
    %c0_9 = arith.constant 0 : index
    %6 = vector.load %arg5[%c0_8, %c0_9] : memref<16x4xf32, #tpu.memory_space<vmem>>, vector<16x4xf32>
    %cst = arith.constant dense<0.000000e+00> : vector<16x128xf32>
    %7 = tpu.matmul %6, %1, %cst {dimension_numbers = #tpu.dot_dimension_numbers<[1], [0], [0], [1], [0, 0, 1, 1], [], []>} : vector<16x4xf32>, vector<4x128xf32>, vector<16x128xf32> -> vector<16x128xf32>
    %c0_10 = arith.constant 0 : index
    %c0_11 = arith.constant 0 : index
    %8 = vector.load %arg6[%c0_10, %c0_11] : memref<16x1xf32, #tpu.memory_space<vmem>>, vector<16x1xf32>
    %9 = vector.broadcast %8 : vector<16x1xf32> to vector<16x128xf32>
    %10 = arith.addf %7, %9 : vector<16x128xf32>
    %11 = arith.truncf %10 : vector<16x128xf32> to vector<16x128xbf16>
    %cst_12 = arith.constant dense<0.000000e+00> : vector<256x128xf32>
    %12 = tpu.matmul %3, %11, %cst_12 {dimension_numbers = #tpu.dot_dimension_numbers<[0], [0], [1], [1], [0, 1, 1, 1], [], []>} : vector<16x256xbf16>, vector<16x128xbf16>, vector<256x128xf32> -> vector<256x128xf32>
    %cst_13 = arith.constant dense<0xFF800000> : vector<128xf32>
    %13 = vector.multi_reduction <maximumf>, %12, %cst_13 [0] : vector<256x128xf32> to vector<128xf32>
    %14 = vector.shape_cast %13 : vector<128xf32> to vector<1x128xf32>
    %15 = vector.broadcast %14 : vector<1x128xf32> to vector<256x128xf32>
    %16 = arith.subf %12, %15 : vector<256x128xf32>
    %17 = math.exp %16 : vector<256x128xf32>
    %cst_14 = arith.constant dense<0.000000e+00> : vector<128xf32>
    %18 = vector.multi_reduction <add>, %17, %cst_14 [0] : vector<256x128xf32> to vector<128xf32>
    %19 = vector.shape_cast %18 : vector<128xf32> to vector<1x128xf32>
    %20 = arith.truncf %17 : vector<256x128xf32> to vector<256x128xbf16>
    %cst_15 = arith.constant dense<0.000000e+00> : vector<4x128xf32>
    %21 = tpu.matmul %5, %20, %cst_15 {dimension_numbers = #tpu.dot_dimension_numbers<[1], [0], [0], [1], [0, 0, 1, 1], [], []>} : vector<4x256xbf16>, vector<256x128xbf16>, vector<4x128xf32> -> vector<4x128xf32>
    %22 = tpu.reciprocal %19 {approx = true} : vector<1x128xf32> -> vector<1x128xf32>
    %23 = vector.broadcast %22 : vector<1x128xf32> to vector<4x128xf32>
    %24 = arith.mulf %21, %23 : vector<4x128xf32>
    %c0_16 = arith.constant 0 : index
    %25 = memref.load %arg7[%c0_16] : memref<1xf32, #tpu.memory_space<smem>>
    %26 = vector.broadcast %25 : f32 to vector<4x128xf32>
    %27 = arith.mulf %26, %24 : vector<4x128xf32>
    %28 = arith.addf %27, %1 : vector<4x128xf32>
    %c0_17 = arith.constant 0 : index
    %c0_18 = arith.constant 0 : index
    %c0_19 = arith.constant 0 : index
    %29 = vector.load %arg8[%c0_17, %c0_18, %c0_19] : memref<1x4x128xf32, #tpu.memory_space<vmem>>, vector<1x4x128xf32>
    %30 = vector.shape_cast %29 : vector<1x4x128xf32> to vector<4x128xf32>
    %31 = vector.shape_cast %28 : vector<4x128xf32> to vector<1x4x128xf32>
    tpu.vector_store %arg8[%c0_17, %c0_18, %c0_19], %31 {strides = array<i32>} : memref<1x4x128xf32, #tpu.memory_space<vmem>>, vector<1x4x128xf32>,
    return
  }
  func.func @transform_0(%arg0: i32, %arg1: i32) -> (i32, i32, i32) {
    %c0_i32 = arith.constant 0 : i32
    %c0_i32_0 = arith.constant 0 : i32
    return %arg0, %c0_i32, %arg1 : i32, i32, i32
  }
  func.func @transform_1(%arg0: i32, %arg1: i32) -> (i32, i32, i32) {
    %c0_i32 = arith.constant 0 : i32
    %c0_i32_0 = arith.constant 0 : i32
    %c0_i32_1 = arith.constant 0 : i32
    return %arg0, %c0_i32, %c0_i32_0 : i32, i32, i32
  }
  func.func @transform_2(%arg0: i32, %arg1: i32) -> (i32, i32, i32) {
    %c0_i32 = arith.constant 0 : i32
    %c0_i32_0 = arith.constant 0 : i32
    %c0_i32_1 = arith.constant 0 : i32
    return %arg0, %c0_i32, %c0_i32_0 : i32, i32, i32
  }
  func.func @transform_3(%arg0: i32, %arg1: i32) -> (i32, i32) {
    %c0_i32 = arith.constant 0 : i32
    %c0_i32_0 = arith.constant 0 : i32
    %c0_i32_1 = arith.constant 0 : i32
    return %c0_i32, %c0_i32_0 : i32, i32
  }
  func.func @transform_4(%arg0: i32, %arg1: i32) -> (i32, i32) {
    %c0_i32 = arith.constant 0 : i32
    %c0_i32_0 = arith.constant 0 : i32
    %c0_i32_1 = arith.constant 0 : i32
    return %c0_i32, %c0_i32_0 : i32, i32
  }
  func.func @transform_5(%arg0: i32, %arg1: i32) -> i32 {
    %c0_i32 = arith.constant 0 : i32
    %c0_i32_0 = arith.constant 0 : i32
    return %c0_i32 : i32
  }
  func.func @transform_6(%arg0: i32, %arg1: i32) -> (i32, i32, i32) {
    %c0_i32 = arith.constant 0 : i32
    %c0_i32_0 = arith.constant 0 : i32
    return %arg0, %c0_i32, %arg1 : i32, i32, i32
  }
}

</mosaic_0001>

<bundles_post_ra>
// kernel: tpu_custom_call.1
= control target key start
LH: loop header
LB: loop body
LE: loop exit
PB: predicated region body
PF: predicated region fallthrough
CT: control target
= control target key end

     0   :  { %s2025_s0 = inlined_call_operand.hbm [shape: f32[2,4,256], index: 0, kind: input, shape index: {}]   ;;  %s2026_s1 = inlined_call_operand.vmem [shape: bf16[2,16,256], index: 1, kind: input, shape index: {}]   ;;  %s2027_s2 = inlined_call_operand.vmem [shape: bf16[2,4,256], index: 2, kind: input, shape index: {}]   ;;  %s2028_s3 = inlined_call_operand.vmem [shape: f32[16,4], index: 3, kind: input, shape index: {}]   ;;  %s2029_s4 = inlined_call_operand.vmem [shape: f32[16,1], index: 4, kind: input, shape index: {}]   ;;  %s2030_s5 = inlined_call_operand.<no memory space> [shape: f32[1], index: 5, kind: input, shape index: {}]   ;;  %s2031_s6 = inlined_call_operand.hbm [shape: f32[2,4,256], index: 6, kind: output, shape index: {}]  }
   0x1   :  { %11 = sst [smem:[#allocation2]] %s2030_s5 }
   0x2   :  { %12 = vsyncpa [#allocation4], 0 }
   0x3   :  { %14 = vsyncpa [#allocation4 + $0x1], 0 }
   0x4   :  { %15 = vsyncpa [#allocation5], 0 }
   0x5   :  { %17 = vsyncpa [#allocation5 + $0x1], 0  ;;  %s1497_s23 = smov 0   ;;  %s1499_s24 = smov 0  }
   0x6   :  { %s1501_s25 = smov 0   ;;  %s1503_s26 = smov 0  }
   0x7   :  { %s1505_s27 = smov 0   ;;  %s1507_s28 = smov 0  }
   0x8   :  { %s1509_s29 = smov 0   ;;  %s1511_s30 = smov 0  }
   0x9 LB: > { %s1053_s5 = sadd.s32 4294967295, %s1454_s30   ;;  %s1054_s7 = sadd.s32 4294967294, %s1454_s30   ;;  %s1454_s30 = sphi %s1511_s30, %s23_s30   ;;  %s1450_s29 = sphi %s1509_s29, %s2054_s29   ;;  %s1446_s28 = sphi %s1507_s28, %s2053_s28   ;;  %s1442_s27 = sphi %s1505_s27, %s2052_s27   ;;  %s1438_s26 = sphi %s1503_s26, %s2051_s26   ;;  %s1434_s25 = sphi %s1501_s25, %s2050_s25   ;;  %s1430_s24 = sphi %s1499_s24, %s2049_s24   ;;  %s1426_s23 = sphi %s1497_s23, %s2048_s23  }
   0xa   : > { %s32_s8 = sadd.s32 1, %s1446_s28  ;;  %s35_s9 = sadd.s32 1, %s1450_s29 }
   0xb   : > { %p33_p0 = scmp.ge.s32.totalorder %s32_s8, 2  ;;  %s44_s10 = sadd.s32 1, %s1434_s25 }
   0xc   : > { %p51_p1 = scmp.ne.s32.totalorder %s1434_s25, %s1430_s24  ;;  %p52_p2 = scmp.eq.s32.totalorder %s1454_s30, 0 }
   0xd   : > { %s2056_s8 = smov (%p33_p0, %s32_s8), 0  ;;  %s2058_s9 = smov (!%p33_p0, %s35_s9), %s1450_s29 }
   0xe   : > { %2035 = sst [smem:[#allocation9_spill]] %s2056_s8  ;;  %s40_s11 = ssub.s32 %s1446_s28, %s2056_s8 }
   0xf   : > { %p1550_p3 = por %p52_p2, %p51_p1  ;;  %p37_p4 = scmp.ge.s32.totalorder %s2058_s9, 2 }
  0x10   : > { %p57_p5 = scmp.ne.s32.totalorder %s1430_s24, %s1426_s23  ;;  %p58_p6 = scmp.eq.s32.totalorder %s1053_s5, 0 }
  0x11   : > { %p198_p7 = scmp.eq.s32.totalorder %s1053_s5, 3  ;;  %s2060_s9 = smov (%p37_p4, %s2058_s9), 0 }
  0x12   : > { %2037 = sst [smem:[#allocation10_spill]] %s2060_s9  ;;  %p1558_p8 = por %p58_p6, %p57_p5 }
  0x13   : > { %p1562_p9 = por %p198_p7, %p51_p1  ;;  %s39_s15 = ssub.s32 %s1450_s29, %s2060_s9 }
  0x14   : > { %p204_p10 = scmp.eq.s32.totalorder %s1054_s7, 3  ;;  %s41_s16 = sor.u32 %s40_s11, %s39_s15 }
  0x15   : > { %s2039_s14 = scalar_select %p1562_p9, 1, 0 }
  0x16   : > { %p42_p11 = scmp.eq.s32.totalorder %s41_s16, 0  ;;  %p1568_p12 = por %p204_p10, %p57_p5 }
  0x17   : > { %p1189_p13 = scmp.lt.s32.totalorder %s1454_s30, 4  ;;  %s233_s18 = sand.u32 1, %s1434_s25  }
  0x18   : > { %s2040_s17 = scalar_select %p1568_p12, 1, 0 }
  0x19   : > { %s1575_s19 = scalar_select %p42_p11, %s1434_s25, %s44_s10  }
  0x1a   : > { %s1057_s20 = sshll.u32 %s233_s18, 2  ;;  %s1058_s21 = sshll.u32 %s1450_s29, 1 }
  0x1b   : > { %s242_s22 = sadd.s32 %s1446_s28, %s1058_s21  ;;  %s237_s5 = scalar_lea.vmem [#allocation3], %s1057_s20 }
  0x1c   : > { %s246_s8 = sshll.u32 %s237_s5, 4  ;;  %s1059_s9 = sshll.u32 %s242_s22, 6  ;;  %s1579_s8 = int_to_ptr.vmem [resolvable:$true] %s246_s8 }
  0x1d   : > { %s1584_s15 = scalar_lea.hbm %s2025_s0, %s1059_s9  ;;  %p1588_p0 = pnand %p1189_p13, %p1550_p3 }
  0x1e   : > { %s234_s16 = scalar_lea.sflag [#allocation4], %s233_s18  ;;  %s1326_s20 = scalar_lea.hbm %s1584_s15, 64 }
  0x1f   : > { %p1327_p4 = scmp.ne.s32.totalorder %s1584_s15, %s1326_s20  ;;  %p1328_p5 = pneg %p1588_p0 }
  0x20   : > { %s1331_s21 = scalar_lea.hbm %s2025_s0, 256  ;;  %p1332_p3 = scmp.lt.u32.totalorder %s1584_s15, %s2025_s0 }
  0x21   : > { %p1329_p6 = pnand %p1328_p5, %p1327_p4  ;;  %p1333_p10 = scmp.lt.u32.totalorder %s1331_s21, %s1326_s20 }
  0x22   : > { %p1335_p13 = scmp.lt.u32.totalorder %s1326_s20, %s1584_s15 }
  0x23   : > { %p1330_p7 = pneg %p1329_p6  ;;  %p1334_p11 = por %p1333_p10, %p1332_p3 }
  0x25   : > { %p1336_p1 = por %p1335_p13, %p1334_p11 }
  0x27   : > { %p1337_p2 = pnand %p1336_p1, %p1330_p7 }
  0x29   : > { %1340 = shalt.err (!%p1337_p2)
}
  0x2a   : > { %s1341_s18 = scalar_lea.vmem %s1579_s8, 64  ;;  %s1456_s7 = smov [#allocation3]  }
  0x2b   : > { %p1342_p4 = scmp.ne.s32.totalorder %s1579_s8, %s1341_s18  ;;  %s1346_s11 = sshll.u32 %s1456_s7, 4  ;;  %s1347_s11 = int_to_ptr.vmem [resolvable:$false] %s1346_s11 }
  0x2c   : > { %s1348_s9 = scalar_lea.vmem %s1347_s11, 128  ;;  %p1349_p9 = scmp.lt.s32.totalorder %s1579_s8, %s1347_s11 }
  0x2d   : > { %p1344_p6 = pnand %p1342_p4, %p1328_p5  ;;  %p1350_p3 = scmp.lt.s32.totalorder %s1348_s9, %s1341_s18 }
  0x2f   : > { %p1345_p12 = pneg %p1344_p6  ;;  %p1351_p10 = por %p1350_p3, %p1349_p9 }
  0x31   : > { %p1352_p11 = pnand %p1351_p10, %p1345_p12 }
  0x33   : > { %1355 = shalt.err (!%p1352_p11)
}
  0x34   : > { %1184 = dma.hbm_to_vmem [thread:$0]  (!%p1588_p0), %s1584_s15, 64, %s1579_s8, %s234_s16  }
  0x35   : > { %p2042_p1 = scmp.lt.s32.totalorder %s1454_s30, 5  ;;  %p2043_p2 = scmp.ge.s32.totalorder %s1454_s30, 1 }
  0x37   : > { %p268_p5 = pnand %p2043_p2, %p2042_p1 }
  0x38   : > { %s1624_s20 = sand.u32 (!%p268_p5), 1, %s1430_s24  }
  0x39   : > { %271 = sbr.rel (%p268_p5) target bundleno = 886 (0x376), region = 44  ;;  %s1061_s12 = sshll.u32 (!%p268_p5), %s1624_s20, 2 }
  0x3a   : > { %s274_s21 = scalar_lea.sflag (!%p268_p5), [#allocation4], %s1624_s20  ;;  %s277_s10 = scalar_lea.vmem (!%p268_p5), [#allocation3], %s1061_s12 }
  0x40   : > { %1417 = dma.done.wait (%p1558_p8), %s274_s21, 64  }
  0x41   : > { %1419 = vsyncadd (%p1558_p8), %s274_s21, 4294967232  ;;  %p316_p9 = scmp.lt.s32.totalorder %s1442_s27, 1  ;;  %v1457_v0 = vmov 0   ;;  %vm352_vm0 = vcmask 1043456   ;;  %vm345_vm1 = vcmask 31744   ;;  %v331_v2 = vld [vmem:[%s2028_s3] sm:$0xff] }
  0x42   : > { %1256 = vset.pattern.permute.xlu0 %v1457_v0  ;;  %v1642_v1 = vld [vmem:[%s277_s10] sm:$0xf]  ;;  %v332_v3 = vld [vmem:[%s2028_s3 + $0x8] sm:$0xff]  ;;  %1140 = vmatprep.mubr.msk.f32.mxu0 %vm345_vm1, %v331_v2  ;;  %vm474_vm2 = vcmask 130048   ;;  %s1090_s13 = sshll.u32 %s1442_s27, 1  ;;  %s315_s9 = scalar_lea.vmem [#allocation6], %s1061_s12 }
  0x43   : > { %s1636_s8 = scalar_select %p316_p9, %s1442_s27, 1  ;;  %1138 = vmatprep.subr.msk.mxu0 %vm352_vm0, %v1642_v1  ;;  %v333_v4 = vld [vmem:[%s2029_s4] sm:$0xff]  ;;  %v334_v6 = vld [vmem:[%s2029_s4 + $0x8] sm:$0xff] }
  0x44   : > { %1139 = vmatpush3.msk.msra.mxu0 %vm352_vm0, %v1642_v1  ;;  %337 = vperm.xlu0 %1256, %v333_v4   ;;  %s940_s7 = sadd.s32 %s1438_s26, %s1090_s13  ;;  %s944_s21 = sshll.u32 %s315_s9, 4  ;;  %s1973_s21 = int_to_ptr.vmem [resolvable:$true] %s944_s21 }
  0x45   : > { %s1094_s15 = sshll.u32 %s1636_s8, 4  ;;  %1141 = vmatmul.mubr.msk.f32.vlgmr.msra.gmra.mrb[0].mxu0 %vm345_vm1, %v332_v3  ;;  %s1095_s16 = sshll.u32 %s1636_s8, 2 }
  0x46   : > { %s320_s5 = scalar_lea.vmem %s2026_s1, %s1094_s15  ;;  %s325_s18 = scalar_lea.vmem %s2027_s2, %s1095_s16 }
  0x47   : > { %v1257_v5 = vld [vmem:[%s320_s5] ss:$8 sps:$4 sm:$0xff]   ;;  %v1259_v7 = vld [vmem:[%s320_s5 + $0x4] ss:$8 sps:$4 sm:$0xff]   ;;  %s923_s8 = sld [smem:[#allocation2]]  ;;  %s1091_s11 = sshll.u32 %s940_s7, 6 }
  0x48   : > { %442 = vxpose.xlu1.c.b16.start.end [1/1] (short) %v1257_v5, 128  ;;  %342 = vperm.xlu0 %1256, %v334_v6   ;;  %v1728_v60 = vld.sshfl [vmem:[%s325_s18] sm:$0x33 pattern:$0x76325410]  ;;  %s1971_s15 = scalar_lea.hbm %s2031_s6, %s1091_s11  ;;  %s929_s26 = scalar_lea.sflag [#allocation5], %s1624_s20 }
  0x49   : > { %v878_v63 = vcombine.high %v1728_v60, %v1728_v60  ;;  %s1356_s16 = scalar_lea.vmem %s1973_s21, 64  ;;  %p2044_p12 = scmp.ne.s32.totalorder %s2039_s14, 0 }
  0x4a   : > { %p1357_p8 = scmp.ne.s32.totalorder %s1973_s21, %s1356_s16  ;;  %s1458_s12 = smov [#allocation6]  }
  0x4b   : > { %913 = vmatprep.mubr.bf16.mxu0 %v878_v63  ;;  %s1360_s22 = sshll.u32 %s1458_s12, 4  ;;  %s1361_s22 = int_to_ptr.vmem [resolvable:$false] %s1360_s22 }
  0x4c   : > { %p1358_p0 = pnand %p1357_p8, %p2044_p12  ;;  %s1362_s5 = scalar_lea.vmem %s1361_s22, 128 }
  0x4d   : > { %p1363_p13 = scmp.lt.s32.totalorder %s1973_s21, %s1361_s22  ;;  %p1364_p4 = scmp.lt.s32.totalorder %s1362_s5, %s1356_s16 }
  0x4e   : > { %p1359_p7 = pneg %p1358_p0 }
  0x4f   : > { %p1365_p6 = por %p1364_p4, %p1363_p13 }
  0x51   : > { %p1366_p3 = pnand %p1365_p6, %p1359_p7 }
  0x65   : > { %458 = vxpose.xlu1.c.b16.start.end [1/1] (short) %v1259_v7, 128 }
  0xae   : > { %v450_v8 = vpop.trf.xlu1 }
  0xaf   : > { %1145 = vmatprep.mubr.msk.bf16.mxu1 %vm474_vm2, %v450_v8 }
  0xb2   : > { %v451_v9 = vpop.trf.xlu1 }
  0xb6   : > { %v452_v10 = vpop.trf.xlu1 }
  0xba   : > { %v453_v11 = vpop.trf.xlu1 }
  0xbe   : > { %v454_v13 = vpop.trf.xlu1 }
  0xc2   : > { %v455_v19 = vpop.trf.xlu1 }
  0xc3   : > { %v338_v12 = vpop.permute.xlu0 %337 }
  0xc6   : > { %v456_v21 = vpop.trf.xlu1 }
  0xc7   : > { %v343_v14 = vpop.permute.xlu0 %342 }
  0xca   : > { %v457_v22 = vpop.trf.xlu1 }
  0xce   : > { %v466_v23 = vpop.trf.xlu1 }
  0xd2   : > { %v467_v24 = vpop.trf.xlu1 }
  0xd6   : > { %v468_v25 = vpop.trf.xlu1 }
  0xda   : > { %v469_v26 = vpop.trf.xlu1 }
  0xde   : > { %v470_v27 = vpop.trf.xlu1 }
  0xe2   : > { %v471_v28 = vpop.trf.xlu1 }
  0xe6   : > { %v472_v29 = vpop.trf.xlu1 }
  0xea   : > { %v473_v30 = vpop.trf.xlu1 }
 0x118   : > { %v1142_v15 = vpop.f32.mrb[0].mxu0 }
 0x119   : > { %v428_v16 = vadd.f32 %v1142_v15, %v343_v14  ;;  %v422_v17 = vpop.f32.mrb[1].mxu0 }
 0x11a   : > { %v423_v18 = vadd.f32 %v422_v17, %v338_v12 }
 0x11c   : > { %v431_v20 = vpack.c.bf16 %v428_v16, %v423_v18 }
 0x11e   : > { %1143 = vmatprep.subr.bf16.mxu1 %v431_v20 }
 0x11f   : > { %1144 = vmatpush3.bf16.msra.mxu1 %v431_v20 }
 0x122   : > { %1146 = vmatmul.mubr.msk.bf16.vlgmr.msra.gmra.mrb[0].mxu1 %vm474_vm2, %v451_v9 }
 0x123   : > { %1149 = vmatprep.mubr.msk.bf16.mxu1 %vm474_vm2, %v452_v10 }
 0x12a   : > { %1150 = vmatmul.mubr.msk.bf16.gmra.mrb[4].mxu1 %vm474_vm2, %v453_v11 }
 0x12b   : > { %1153 = vmatprep.mubr.msk.bf16.mxu1 %vm474_vm2, %v454_v13 }
 0x132   : > { %1154 = vmatmul.mubr.msk.bf16.gmra.mrb[8].mxu1 %vm474_vm2, %v455_v19 }
 0x133   : > { %1157 = vmatprep.mubr.msk.bf16.mxu1 %vm474_vm2, %v456_v21 }
 0x13a   : > { %1158 = vmatmul.mubr.msk.bf16.gmra.mrb[12].mxu1 %vm474_vm2, %v457_v22 }
 0x13b   : > { %1161 = vmatprep.mubr.msk.bf16.mxu1 %vm474_vm2, %v466_v23 }
 0x142   : > { %1162 = vmatmul.mubr.msk.bf16.gmra.mrb[16].mxu1 %vm474_vm2, %v467_v24 }
 0x143   : > { %1165 = vmatprep.mubr.msk.bf16.mxu1 %vm474_vm2, %v468_v25 }
 0x14a   : > { %1166 = vmatmul.mubr.msk.bf16.gmra.mrb[20].mxu1 %vm474_vm2, %v469_v26 }
 0x14b   : > { %1169 = vmatprep.mubr.msk.bf16.mxu1 %vm474_vm2, %v470_v27 }
 0x152   : > { %1170 = vmatmul.mubr.msk.bf16.gmra.mrb[24].mxu1 %vm474_vm2, %v471_v28 }
 0x153   : > { %1173 = vmatprep.mubr.msk.bf16.mxu1 %vm474_vm2, %v472_v29 }
 0x15a   : > { %1174 = vmatmul.mubr.msk.bf16.gmra.mrb[28].mxu1 %vm474_vm2, %v473_v30 }
 0x1f5   : > { %v1674_v31 = vpop.f32.mrb[0].mxu1 }
 0x1f6   : > { %v1676_v32 = vpop.f32.mrb[1].mxu1 }
 0x1f7   : > { %v1678_v33 = vpop.f32.mrb[2].mxu1 }
 0x1f8   : > { %v1680_v34 = vpop.f32.mrb[3].mxu1 }
 0x1fd   : > { %v1682_v35 = vpop.f32.mrb[4].mxu1 }
 0x1fe   : > { %v686_v36 = vmax.f32 %v1674_v31, %v1682_v35  ;;  %v1686_v37 = vpop.f32.mrb[5].mxu1 }
 0x1ff   : > { %v684_v38 = vmax.f32 %v1676_v32, %v1686_v37  ;;  %v1690_v39 = vpop.f32.mrb[6].mxu1 }
 0x200   : > { %v687_v40 = vmax.f32 %v1678_v33, %v1690_v39  ;;  %v1694_v41 = vpop.f32.mrb[7].mxu1 }
 0x201   : > { %v685_v42 = vmax.f32 %v1680_v34, %v1694_v41 }
 0x205   : > { %v1698_v43 = vpop.f32.mrb[8].mxu1 }
 0x206   : > { %v690_v44 = vmax.f32 %v686_v36, %v1698_v43  ;;  %v1701_v45 = vpop.f32.mrb[9].mxu1 }
 0x207   : > { %v688_v46 = vmax.f32 %v684_v38, %v1701_v45  ;;  %v1704_v47 = vpop.f32.mrb[10].mxu1 }
 0x208   : > { %v691_v48 = vmax.f32 %v687_v40, %v1704_v47  ;;  %v1707_v49 = vpop.f32.mrb[11].mxu1 }
 0x209   : > { %v689_v50 = vmax.f32 %v685_v42, %v1707_v49 }
 0x20d   : > { %v1710_v51 = vpop.f32.mrb[12].mxu1 }
 0x20e   : > { %v694_v52 = vmax.f32 %v690_v44, %v1710_v51  ;;  %v1713_v53 = vpop.f32.mrb[13].mxu1 }
 0x20f   : > { %v692_v54 = vmax.f32 %v688_v46, %v1713_v53  ;;  %v1716_v55 = vpop.f32.mrb[14].mxu1 }
 0x210   : > { %v695_v56 = vmax.f32 %v691_v48, %v1716_v55  ;;  %v1719_v57 = vpop.f32.mrb[15].mxu1 }
 0x211   : > { %v693_v58 = vmax.f32 %v689_v50, %v1719_v57 }
 0x215   : > { %v1726_v59 = vpop.f32.mrb[16].mxu1 }
 0x216   : > { %v698_v61 = vmax.f32 %v694_v52, %v1726_v59  ;;  %v1731_v62 = vpop.f32.mrb[17].mxu1 }
 0x217   : > { %v696_v0 = vmax.f32 %v692_v54, %v1731_v62  ;;  %v1736_v2 = vpop.f32.mrb[18].mxu1 }
 0x218   : > { %v699_v3 = vmax.f32 %v695_v56, %v1736_v2  ;;  %v1739_v4 = vpop.f32.mrb[19].mxu1 }
 0x219   : > { %v697_v5 = vmax.f32 %v693_v58, %v1739_v4 }
 0x21d   : > { %v1742_v6 = vpop.f32.mrb[20].mxu1 }
 0x21e   : > { %v702_v7 = vmax.f32 %v698_v61, %v1742_v6  ;;  %v1745_v8 = vpop.f32.mrb[21].mxu1 }
 0x21f   : > { %v700_v9 = vmax.f32 %v696_v0, %v1745_v8  ;;  %v1748_v10 = vpop.f32.mrb[22].mxu1 }
 0x220   : > { %v703_v11 = vmax.f32 %v699_v3, %v1748_v10  ;;  %v1751_v12 = vpop.f32.mrb[23].mxu1 }
 0x221   : > { %v701_v13 = vmax.f32 %v697_v5, %v1751_v12 }
 0x225   : > { %v1754_v14 = vpop.f32.mrb[24].mxu1 }
 0x226   : > { %v706_v15 = vmax.f32 %v702_v7, %v1754_v14  ;;  %v1757_v16 = vpop.f32.mrb[25].mxu1 }
 0x227   : > { %v704_v17 = vmax.f32 %v700_v9, %v1757_v16  ;;  %v1760_v18 = vpop.f32.mrb[26].mxu1 }
 0x228   : > { %v707_v19 = vmax.f32 %v703_v11, %v1760_v18  ;;  %v1763_v20 = vpop.f32.mrb[27].mxu1 }
 0x229   : > { %v705_v21 = vmax.f32 %v701_v13, %v1763_v20 }
 0x22d   : > { %v1766_v22 = vpop.f32.mrb[28].mxu1 }
 0x22e   : > { %v710_v23 = vmax.f32 %v706_v15, %v1766_v22  ;;  %v1769_v24 = vpop.f32.mrb[29].mxu1 }
 0x22f   : > { %v708_v25 = vmax.f32 %v704_v17, %v1769_v24  ;;  %v1772_v26 = vpop.f32.mrb[30].mxu1 }
 0x230   : > { %v711_v27 = vmax.f32 %v707_v19, %v1772_v26  ;;  %v1775_v28 = vpop.f32.mrb[31].mxu1 }
 0x231   : > { %v709_v29 = vmax.f32 %v705_v21, %v1775_v28 }
 0x232   : > { %v713_v30 = vmax.f32 %v710_v23, %v711_v27 }
 0x233   : > { %v712_v36 = vmax.f32 %v708_v25, %v709_v29 }
 0x235   : > { %v714_v38 = vmax.f32 %v712_v36, %v713_v30 }
 0x237   : > { %v715_v40 = vrot.slane %v714_v38, 4 }
 0x239   : > { %v716_v42 = vmax.f32 %v714_v38, %v715_v40 }
 0x23b   : > { %v717_v44 = vrot.slane %v716_v42, 2 }
 0x23d   : > { %v718_v46 = vmax.f32 %v716_v42, %v717_v44 }
 0x23f   : > { %v719_v48 = vrot.slane %v718_v46, 1 }
 0x241   : > { %v1778_v50 = vmax.f32 %v718_v46, %v719_v48 }
 0x243   : > { %v721_v52 = vsub.f32 %v1676_v32, %v1778_v50  ;;  %v722_v54 = vsub.f32 %v1680_v34, %v1778_v50  ;;  %v723_v56 = vsub.f32 %v1674_v31, %v1778_v50  ;;  %v724_v58 = vsub.f32 %v1678_v33, %v1778_v50 }
 0x244   : > { %v725_v61 = vsub.f32 %v1686_v37, %v1778_v50  ;;  %v726_v63 = vsub.f32 %v1694_v41, %v1778_v50  ;;  %v727_v0 = vsub.f32 %v1682_v35, %v1778_v50  ;;  %v728_v32 = vsub.f32 %v1690_v39, %v1778_v50 }
 0x245   : > { %v729_v34 = vsub.f32 %v1701_v45, %v1778_v50  ;;  %v730_v31 = vsub.f32 %v1707_v49, %v1778_v50  ;;  %v731_v33 = vsub.f32 %v1698_v43, %v1778_v50  ;;  %v732_v37 = vsub.f32 %v1704_v47, %v1778_v50 }
 0x246   : > { %v733_v41 = vsub.f32 %v1713_v53, %v1778_v50  ;;  %v734_v35 = vsub.f32 %v1719_v57, %v1778_v50  ;;  %v735_v39 = vsub.f32 %v1710_v51, %v1778_v50  ;;  %v736_v45 = vsub.f32 %v1716_v55, %v1778_v50 }
 0x247   : > { %v737_v49 = vsub.f32 %v1731_v62, %v1778_v50  ;;  %v738_v43 = vsub.f32 %v1739_v4, %v1778_v50  ;;  %v739_v47 = vsub.f32 %v1726_v59, %v1778_v50  ;;  %v740_v53 = vsub.f32 %v1736_v2, %v1778_v50 }
 0x248   : > { %v741_v57 = vsub.f32 %v1745_v8, %v1778_v50  ;;  %v742_v51 = vsub.f32 %v1751_v12, %v1778_v50  ;;  %v743_v55 = vsub.f32 %v1742_v6, %v1778_v50  ;;  %v744_v62 = vsub.f32 %v1748_v10, %v1778_v50 }
 0x249   : > { %v745_v3 = vsub.f32 %v1757_v16, %v1778_v50  ;;  %v746_v59 = vsub.f32 %v1763_v20, %v1778_v50  ;;  %v747_v2 = vsub.f32 %v1754_v14, %v1778_v50  ;;  %v748_v4 = vsub.f32 %v1760_v18, %v1778_v50 }
 0x24a   : > { %v749_v5 = vsub.f32 %v1769_v24, %v1778_v50  ;;  %v750_v7 = vsub.f32 %v1775_v28, %v1778_v50  ;;  %v751_v8 = vsub.f32 %v1766_v22, %v1778_v50  ;;  %v752_v9 = vsub.f32 %v1772_v26, %v1778_v50 }
 0x24b   : > { %v753_v11 = vmul.f32 1.442695, %v721_v52  ;;  %v755_v13 = vmul.f32 1.442695, %v722_v54  ;;  %v757_v15 = vmul.f32 1.442695, %v723_v56 }
 0x24c   : > { %v759_v17 = vmul.f32 1.442695, %v724_v58  ;;  %v761_v19 = vmul.f32 1.442695, %v725_v61  ;;  %v763_v21 = vmul.f32 1.442695, %v726_v63 }
 0x24d   : > { %1260 = vpow2.f32 %v753_v11  ;;  %v765_v23 = vmul.f32 1.442695, %v727_v0  ;;  %v767_v25 = vmul.f32 1.442695, %v728_v32  ;;  %v769_v27 = vmul.f32 1.442695, %v729_v34 }
 0x24e   : > { %1262 = vpow2.f32 %v755_v13  ;;  %v771_v29 = vmul.f32 1.442695, %v730_v31  ;;  %v773_v30 = vmul.f32 1.442695, %v731_v33  ;;  %v775_v36 = vmul.f32 1.442695, %v732_v37 }
 0x24f   : > { %1264 = vpow2.f32 %v757_v15  ;;  %v777_v38 = vmul.f32 1.442695, %v733_v41  ;;  %v779_v40 = vmul.f32 1.442695, %v734_v35  ;;  %v781_v44 = vmul.f32 1.442695, %v735_v39 }
 0x250   : > { %1266 = vpow2.f32 %v759_v17  ;;  %v783_v48 = vmul.f32 1.442695, %v736_v45  ;;  %v785_v54 = vmul.f32 1.442695, %v737_v49  ;;  %v787_v63 = vmul.f32 1.442695, %v738_v43 }
 0x251   : > { %1268 = vpow2.f32 %v761_v19  ;;  %v789_v32 = vmul.f32 1.442695, %v739_v47  ;;  %v791_v37 = vmul.f32 1.442695, %v740_v53  ;;  %v793_v35 = vmul.f32 1.442695, %v741_v57 }
 0x252   : > { %1270 = vpow2.f32 %v763_v21  ;;  %v795_v43 = vmul.f32 1.442695, %v742_v51  ;;  %v797_v53 = vmul.f32 1.442695, %v743_v55  ;;  %v799_v12 = vmul.f32 1.442695, %v744_v62 }
 0x253   : > { %1272 = vpow2.f32 %v765_v23  ;;  %v801_v6 = vmul.f32 1.442695, %v745_v3  ;;  %v803_v10 = vmul.f32 1.442695, %v746_v59  ;;  %v805_v16 = vmul.f32 1.442695, %v747_v2 }
 0x254   : > { %1274 = vpow2.f32 %v767_v25  ;;  %v807_v20 = vmul.f32 1.442695, %v748_v4  ;;  %v809_v14 = vmul.f32 1.442695, %v749_v5  ;;  %v811_v18 = vmul.f32 1.442695, %v750_v7 }
 0x255   : > { %1276 = vpow2.f32 %v769_v27  ;;  %v813_v27 = vmul.f32 1.442695, %v751_v8 }
 0x256   : > { %1278 = vpow2.f32 %v771_v29 }
 0x257   : > { %v1844_v42 = vpop.eup %1260  ;;  %1280 = vpow2.f32 %v773_v30  ;;  %v815_v30 = vmul.f32 1.442695, %v752_v9 }
 0x258   : > { %v1846_v46 = vpop.eup %1262  ;;  %1282 = vpow2.f32 %v775_v36 }
 0x259   : > { %v1848_v52 = vpop.eup %1264  ;;  %1284 = vpow2.f32 %v777_v38  ;;  %v817_v56 = vadd.f32 %v1846_v46, %v1844_v42  ;;  %v854_v58 = vpack.c.bf16 %v1846_v46, %v1844_v42 }
 0x25a   : > { %v1854_v61 = vpop.eup %1266  ;;  %1286 = vpow2.f32 %v779_v40 }
 0x25b   : > { %v1856_v0 = vpop.eup %1268  ;;  %1288 = vpow2.f32 %v781_v44  ;;  %v818_v34 = vadd.f32 %v1848_v52, %v817_v56  ;;  %v855_v31 = vpack.c.bf16 %v1854_v61, %v1848_v52 }
 0x25c   : > { %v1861_v33 = vpop.eup %1270  ;;  %1290 = vpow2.f32 %v783_v48 }
 0x25d   : > { %v1863_v41 = vpop.eup %1272  ;;  %1292 = vpow2.f32 %v785_v54  ;;  %v819_v39 = vadd.f32 %v1854_v61, %v818_v34  ;;  %v856_v45 = vpack.c.bf16 %v1861_v33, %v1856_v0 }
 0x25e   : > { %v1868_v49 = vpop.eup %1274  ;;  %1294 = vpow2.f32 %v787_v63 }
 0x25f   : > { %v1873_v47 = vpop.eup %1276  ;;  %1296 = vpow2.f32 %v789_v32  ;;  %v820_v57 = vadd.f32 %v1856_v0, %v819_v39  ;;  %v857_v11 = vpack.c.bf16 %v1868_v49, %v1863_v41 }
 0x260   : > { %v1881_v13 = vpop.eup %1278  ;;  %1298 = vpow2.f32 %v791_v37 }
 0x261   : > { %v1886_v51 = vpop.eup %1280  ;;  %1300 = vpow2.f32 %v793_v35  ;;  %v821_v55 = vadd.f32 %v1861_v33, %v820_v57  ;;  %v858_v15 = vpack.c.bf16 %v1881_v13, %v1873_v47 }
 0x262   : > { %v1894_v17 = vpop.eup %1282  ;;  %1302 = vpow2.f32 %v795_v43 }
 0x263   : > { %v1899_v62 = vpop.eup %1284  ;;  %1304 = vpow2.f32 %v797_v53  ;;  %v822_v3 = vadd.f32 %v1863_v41, %v821_v55  ;;  %v859_v19 = vpack.c.bf16 %v1894_v17, %v1886_v51 }
 0x264   : > { %v1907_v21 = vpop.eup %1286  ;;  %1306 = vpow2.f32 %v799_v12 }
 0x265   : > { %v1912_v59 = vpop.eup %1288  ;;  %1308 = vpow2.f32 %v801_v6  ;;  %v823_v2 = vadd.f32 %v1868_v49, %v822_v3  ;;  %v860_v23 = vpack.c.bf16 %v1907_v21, %v1899_v62 }
 0x266   : > { %v1920_v25 = vpop.eup %1290  ;;  %1310 = vpow2.f32 %v803_v10 }
 0x267   : > { %v1293_v4 = vpop.eup %1292  ;;  %1312 = vpow2.f32 %v805_v16  ;;  %v824_v24 = vadd.f32 %v1873_v47, %v823_v2  ;;  %v861_v5 = vpack.c.bf16 %v1920_v25, %v1912_v59 }
 0x268   : > { %v1295_v29 = vpop.eup %1294  ;;  %1314 = vpow2.f32 %v807_v20 }
 0x269   : > { %v1297_v36 = vpop.eup %1296  ;;  %1316 = vpow2.f32 %v809_v14  ;;  %v825_v28 = vadd.f32 %v1881_v13, %v824_v24  ;;  %v862_v7 = vpack.c.bf16 %v1295_v29, %v1293_v4 }
 0x26a   : > { %v1299_v38 = vpop.eup %1298  ;;  %1318 = vpow2.f32 %v811_v18  ;;  %v924_v18 = vstv %s923_s8 }
 0x26b   : > { %v1301_v22 = vpop.eup %1300  ;;  %1320 = vpow2.f32 %v813_v27  ;;  %v826_v8 = vadd.f32 %v1886_v51, %v825_v28  ;;  %1116 = vmatprep.subr.bf16.mxu0 %v862_v7  ;;  %v863_v40 = vpack.c.bf16 %v1299_v38, %v1297_v36 }
 0x26c   : > { %v1303_v44 = vpop.eup %1302  ;;  %1322 = vpow2.f32 %v815_v30  ;;  %1117 = vmatpush3.bf16.msra.mxu0 %v854_v58 }
 0x26d   : > { %v1305_v26 = vpop.eup %1304  ;;  %v827_v50 = vadd.f32 %v1894_v17, %v826_v8  ;;  %1118 = vmatprep.subr.bf16.mxu0 %v863_v40  ;;  %v864_v9 = vpack.c.bf16 %v1303_v44, %v1301_v22 }
 0x26e   : > { %v1307_v48 = vpop.eup %1306 }
 0x26f   : > { %v1309_v54 = vpop.eup %1308  ;;  %v828_v56 = vadd.f32 %v1899_v62, %v827_v50  ;;  %v865_v63 = vpack.c.bf16 %v1307_v48, %v1305_v26 }
 0x270   : > { %v1311_v32 = vpop.eup %1310  ;;  %1119 = vmatpush3.bf16.msra.mxu0 %v855_v31 }
 0x271   : > { %v1313_v34 = vpop.eup %1312  ;;  %v829_v37 = vadd.f32 %v1907_v21, %v828_v56  ;;  %1120 = vmatprep.subr.bf16.mxu0 %v864_v9  ;;  %v866_v42 = vpack.c.bf16 %v1311_v32, %v1309_v54 }
 0x272   : > { %v1315_v46 = vpop.eup %1314 }
 0x273   : > { %v1317_v58 = vpop.eup %1316  ;;  %v830_v35 = vadd.f32 %v1912_v59, %v829_v37  ;;  %v867_v39 = vpack.c.bf16 %v1315_v46, %v1313_v34 }
 0x274   : > { %v1319_v43 = vpop.eup %1318  ;;  %1121 = vmatpush3.bf16.msra.mxu0 %v856_v45 }
 0x275   : > { %v1321_v53 = vpop.eup %1320  ;;  %v831_v57 = vadd.f32 %v1920_v25, %v830_v35  ;;  %1122 = vmatprep.subr.bf16.mxu0 %v865_v63  ;;  %v868_v52 = vpack.c.bf16 %v1319_v43, %v1317_v58 }
 0x276   : > { %v1323_v61 = vpop.eup %1322 }
 0x277   : > { %v832_v31 = vadd.f32 %v1293_v4, %v831_v57  ;;  %v869_v12 = vpack.c.bf16 %v1323_v61, %v1321_v53 }
 0x278   : > { %1123 = vmatpush3.bf16.msra.mxu0 %v857_v11 }
 0x279   : > { %v833_v6 = vadd.f32 %v1295_v29, %v832_v31  ;;  %1124 = vmatprep.subr.bf16.mxu0 %v866_v42 }
 0x27b   : > { %v834_v55 = vadd.f32 %v1297_v36, %v833_v6 }
 0x27c   : > { %1125 = vmatpush3.bf16.msra.mxu0 %v858_v15 }
 0x27d   : > { %v835_v0 = vadd.f32 %v1299_v38, %v834_v55  ;;  %1126 = vmatprep.subr.bf16.mxu0 %v867_v39 }
 0x27f   : > { %v836_v33 = vadd.f32 %v1301_v22, %v835_v0 }
 0x280   : > { %1127 = vmatpush3.bf16.msra.mxu0 %v859_v19 }
 0x281   : > { %v837_v45 = vadd.f32 %v1303_v44, %v836_v33  ;;  %1128 = vmatprep.subr.bf16.mxu0 %v868_v52 }
 0x283   : > { %v838_v10 = vadd.f32 %v1305_v26, %v837_v45 }
 0x284   : > { %1129 = vmatpush3.bf16.msra.mxu0 %v860_v23 }
 0x285   : > { %v839_v41 = vadd.f32 %v1307_v48, %v838_v10  ;;  %1130 = vmatprep.subr.bf16.mxu0 %v869_v12 }
 0x287   : > { %v840_v49 = vadd.f32 %v1309_v54, %v839_v41 }
 0x288   : > { %1131 = vmatpush3.bf16.msra.mxu0 %v861_v5 }
 0x289   : > { %v841_v47 = vadd.f32 %v1311_v32, %v840_v49 }
 0x28b   : > { %v842_v11 = vadd.f32 %v1313_v34, %v841_v47  ;;  %914 = vmatmul.mubr.bf16.vlgmr.msra.gmra.mrb[4].mxu0 %v1728_v60 }
 0x28d   : > { %v843_v13 = vadd.f32 %v1315_v46, %v842_v11 }
 0x28f   : > { %v844_v15 = vadd.f32 %v1317_v58, %v843_v13 }
 0x291   : > { %v845_v51 = vadd.f32 %v1319_v43, %v844_v15 }
 0x293   : > { %v846_v17 = vadd.f32 %v1321_v53, %v845_v51 }
 0x295   : > { %v847_v16 = vadd.f32 %v1323_v61, %v846_v17 }
 0x297   : > { %v848_v3 = vrot.slane %v847_v16, 4 }
 0x299   : > { %v849_v19 = vadd.f32 %v848_v3, %v847_v16 }
 0x29b   : > { %v850_v20 = vrot.slane %v849_v19, 2 }
 0x29d   : > { %v851_v62 = vadd.f32 %v850_v20, %v849_v19 }
 0x29f   : > { %v852_v21 = vrot.slane %v851_v62, 1 }
 0x2a1   : > { %v853_v59 = vadd.f32 %v852_v21, %v851_v62 }
 0x2a3   : > { %1324 = vrcp.f32 %v853_v59 }
 0x2ad   : > { %v1325_v25 = vpop.eup %1324 }
 0x35e   : > { %v1132_v14 = vpop.f32.mrb[4].mxu0 }
 0x35f   : > { %v1133_v2 = vpop.f32.mrb[5].mxu0 }
 0x360   : > { %v1134_v60 = vadd.f32 %v1133_v2, %v1132_v14  ;;  %v1135_v23 = vpop.f32.mrb[6].mxu0 }
 0x361   : > { %v1136_v4 = vpop.f32.mrb[7].mxu0 }
 0x362   : > { %v922_v27 = vmul.f32 %v1325_v25, %v1134_v60 }
 0x364   : > { %v925_v24 = vmul.f32 %v924_v18, %v922_v27 }
 0x366   : > { %v926_v5 = vadd.f32 %v925_v24, %v1642_v1 }
 0x368   : > { %927 = vst [vmem:[%s315_s9] sm:$0xf] %v926_v5 }
 0x369   : > { %1369 = shalt.err (!%p1366_p3)
}
 0x36a   : > { %s1370_s20 = scalar_lea.hbm %s1971_s15, 64  ;;  %s1374_s13 = scalar_lea.hbm %s2031_s6, 256 }
 0x36b   : > { %p1371_p10 = scmp.ne.s32.totalorder %s1971_s15, %s1370_s20  ;;  %p1375_p2 = scmp.lt.u32.totalorder %s1971_s15, %s2031_s6 }
 0x36c   : > { %p1376_p5 = scmp.lt.u32.totalorder %s1374_s13, %s1370_s20  ;;  %p1378_p8 = scmp.lt.u32.totalorder %s1370_s20, %s1971_s15 }
 0x36d   : > { %p1372_p11 = pnand %p1371_p10, %p2044_p12 }
 0x36e   : > { %p1377_p9 = por %p1376_p5, %p1375_p2 }
 0x36f   : > { %p1373_p1 = pneg %p1372_p11 }
 0x370   : > { %p1379_p0 = por %p1378_p8, %p1377_p9 }
 0x372   : > { %p1380_p7 = pnand %p1379_p0, %p1373_p1 }
 0x374   : > { %1383 = shalt.err (!%p1380_p7)
}
 0x375   : > { %1179 = dma.vmem_to_hbm [thread:$0]  (%p2044_p12), %s1973_s21, 64, %s1971_s15, %s929_s26  }
 0x376 PF: > { %p1190_p13 = scmp.ge.s32.totalorder %s1454_s30, 2  ;;  %s956_s9 = sand.u32 1, %s1426_s23  }
 0x377   : > { %p2045_p4 = scmp.ne.s32.totalorder %s2040_s17, 0  ;;  %s957_s10 = scalar_lea.sflag [#allocation5], %s956_s9 }
 0x379   : > { %p1186_p6 = pnand %p1190_p13, %p2045_p4 }
 0x37b   : > { %1421 = dma.done.wait (!%p1186_p6), %s957_s10, 64  }
 0x37c   : > { %1423 = vsyncadd (!%p1186_p6), %s957_s10, 4294967232  ;;  %s23_s30 = sadd.s32 1, %s1454_s30   ;;  %s2046_s14 = sld [smem:[#allocation9_spill]] }
 0x37d   : > { %p20_p3 = scmp.ge.s32.totalorder %s23_s30, 6   ;;  %s2047_s21 = sld [smem:[#allocation10_spill]] }
 0x37e   : > { %s2048_s23 = smov %s1430_s24  ;;  %s2049_s24 = smov %s1434_s25 }
 0x37f   : > { %s2050_s25 = smov %s1575_s19  ;;  %s2051_s26 = smov %s1446_s28 }
 0x380   : > { %s2052_s27 = smov %s1450_s29  ;;  %22 = sbr.rel (!%p20_p3) target bundleno = 9 (0x9), region = 95 }
 0x382   : > { %s2053_s28 = smov %s2046_s14 }
 0x383   : > { %s2054_s29 = smov %s2047_s21 }
 0x387   :  { %962 = vsyncpa [#allocation4], 1 }
 0x388   :  { %964 = vsyncpa [#allocation4 + $0x1], 1 }
 0x389   :  { %965 = vsyncpa [#allocation5], 1 }
 0x38a   :  { %967 = vsyncpa [#allocation5 + $0x1], 1 }

</bundles_post_ra>
